<compile_context>
chip_gen: v7x
topology: tpu7x:2x2x1
jax: 0.10.0
libtpu: 0.0.40
codegen_flags: <defaults>
</compile_context>

<pallas_src>
import functools

import jax
import jax.numpy as jnp
from jax.experimental import pallas as pl
from jax.experimental.pallas import tpu as pltpu


def _affine_kernel(gamma_ref, beta_ref, x_ref, o_ref, *, block_rows, num_channels):
    """Per-channel affine on a row-tiled (NC, HW) view.

    gamma_ref/beta_ref: SMEM (C,) f32 scalar-prefetch args.
    x_ref/o_ref:        VMEM (block_rows, HW) f32 tiles (aliased in/out).

    Rows of the 2-D view are (n, c) flattened n-major, so global row r has
    channel r % C.  The per-row (block_rows, 1) gamma/beta columns are built
    in-kernel from the SMEM scalars (no side DMAs); C is tiny, so the C-1
    vector selects are negligible VALU filler under the memory-bound regime.
    """
    x = x_ref[...]                                                   # (rows, HW) f32
    rows = x.shape[0]
    row0 = pl.program_id(0) * block_rows
    row_c = (row0 + jax.lax.broadcasted_iota(jnp.int32, (rows, 1), 0)) % num_channels

    g = jnp.full((rows, 1), gamma_ref[0], dtype=x.dtype)
    b = jnp.full((rows, 1), beta_ref[0], dtype=x.dtype)
    for c in range(1, num_channels):                                 # static Python loop, C small
        g = jnp.where(row_c == c, gamma_ref[c], g)
        b = jnp.where(row_c == c, beta_ref[c], b)

    o_ref[...] = g * x + b                                           # one dense FMA + lane-dense vst


def _apply_fn(x_nchw, gamma_c, beta_c):
    """Always applies fn (the RandomApply branch decision lives in the caller)."""
    N, C, H, W = x_nchw.shape
    NC, HW = N * C, H * W
    x2d = x_nchw.reshape(NC, HW)                                     # lane axis = HW (multiple of 128)

    # Row tiling: biggest lane-dense row block whose double-buffered in+out
    # footprint stays well inside the smallest default scoped-VMEM budget
    # (v7x: 32 MiB).  8 MiB per tile -> ~32 MiB with 2x in + 2x out buffers
    # is too tight, so cap at 4 MiB per tile (~16 MiB pipelined footprint).
    bytes_per_row = HW * 4
    max_block_rows = max(8, (4 * 1024 * 1024) // max(bytes_per_row, 1))
    if NC <= max_block_rows:
        block_rows = NC                                              # full dim -> no (8,128) issue
    else:
        block_rows = max(8, (max_block_rows // 8) * 8)               # sublane-aligned
    grid = (pl.cdiv(NC, block_rows),)

    out2d = pl.pallas_call(
        functools.partial(_affine_kernel, block_rows=block_rows, num_channels=C),
        out_shape=jax.ShapeDtypeStruct((NC, HW), x2d.dtype),
        grid_spec=pltpu.PrefetchScalarGridSpec(
            num_scalar_prefetch=2,                                   # gamma, beta -> SMEM
            grid=grid,
            in_specs=[pl.BlockSpec((block_rows, HW), lambda i, g, b: (i, 0))],
            out_specs=pl.BlockSpec((block_rows, HW), lambda i, g, b: (i, 0)),
        ),
        # Alias x2d (flat input index 2: after the 2 scalar-prefetch args) to output 0.
        input_output_aliases={2: 0},
        compiler_params=pltpu.CompilerParams(
            dimension_semantics=("parallel",),                       # rows shard across v7x's 2 TCs
        ),
    )(gamma_c.astype(jnp.float32), beta_c.astype(jnp.float32), x2d)

    return out2d.reshape(N, C, H, W)


@jax.jit
def random_apply(x_nchw, gamma_c, beta_c, apply_flag):
    """RandomApply.forward: identity (no kernel launch) unless apply_flag is True."""
    return jax.lax.cond(
        apply_flag,
        lambda x: _apply_fn(x, gamma_c, beta_c),
        lambda x: x,
        x_nchw,
    )


if __name__ == "__main__":
    key = jax.random.PRNGKey(0)
    k_x, k_u = jax.random.split(key)

    # Small shapes consistent with an NCHW image input.
    N, C, H, W = 2, 4, 16, 16
    x = jax.random.normal(k_x, (N, C, H, W), dtype=jnp.float32)

    # Deterministic "fn" parameters (per-channel affine jitter).
    gamma = 1.0 + 0.1 * jnp.arange(C, dtype=jnp.float32)   # [1.0, 1.1, 1.2, 1.3]
    beta = 0.05 * jnp.arange(C, dtype=jnp.float32)          # [0.0, 0.05, 0.10, 0.15]

    # RandomApply: if random.random() > p -> identity, else apply fn.
    # TODO(synk): the host-side Python random.random() per-forward draw has no
    # in-kernel equivalent; it is modeled as a JAX uniform draw feeding lax.cond.
    p = 0.7
    u = jax.random.uniform(k_u, ())
    apply_flag = u <= p

    out = jax.block_until_ready(random_apply(x, gamma, beta, apply_flag))

    # Reference check (pure JAX) for the random draw.
    fn_x = x * gamma.reshape(1, C, 1, 1) + beta.reshape(1, C, 1, 1)
    ref = jnp.where(apply_flag, fn_x, x)
    assert jnp.allclose(out, ref, atol=1e-6), "mismatch vs reference (random draw)"

    # Force both branches so the Pallas kernel definitely executes once.
    out_apply = jax.block_until_ready(random_apply(x, gamma, beta, jnp.asarray(True)))
    out_ident = jax.block_until_ready(random_apply(x, gamma, beta, jnp.asarray(False)))
    assert jnp.allclose(out_apply, fn_x, atol=1e-6), "mismatch vs reference (apply branch)"
    assert jnp.allclose(out_ident, x), "mismatch vs reference (identity branch)"

    print("KERNEL_OK")
</pallas_src>

<mosaic_0001>
module attributes {stable_mosaic.version = 11 : i64} {
  func.func @_affine_kernel(%arg0: i32, %arg1: memref<4xf32, #tpu.memory_space<smem>>, %arg2: memref<4xf32, #tpu.memory_space<smem>>, %arg3: memref<8x256xf32, #tpu.memory_space<vmem>>, %arg4: memref<8x256xf32, #tpu.memory_space<vmem>>) attributes {dimension_semantics = [#tpu.dimension_semantics<parallel>], iteration_bounds = array<i64: 1>, scalar_prefetch = 2 : i64, scratch_operands = 0 : i64, tpu.core_type = #tpu.core_type<tc>, window_params = [{transform_indices = @transform_0, window_bounds = array<i64: 8, 256>}, {transform_indices = @transform_1, window_bounds = array<i64: 8, 256>}]} {
    %c0 = arith.constant 0 : index
    %c0_0 = arith.constant 0 : index
    %0 = vector.load %arg3[%c0, %c0_0] : memref<8x256xf32, #tpu.memory_space<vmem>>, vector<8x256xf32>
    %c8_i32 = arith.constant 8 : i32
    %1 = arith.muli %arg0, %c8_i32 : i32
    %2 = tpu.iota {dimensions = array<i32: 0>} : vector<8x1xi32>
    %3 = vector.broadcast %1 : i32 to vector<8x1xi32>
    %4 = arith.addi %3, %2 : vector<8x1xi32>
    %c4_i32 = arith.constant 4 : i32
    %c0_i32 = arith.constant 0 : i32
    %5 = arith.cmpi eq, %c4_i32, %c0_i32 : i32
    %c1_i32 = arith.constant 1 : i32
    %6 = arith.select %5, %c1_i32, %c4_i32 : i32
    %7 = vector.broadcast %6 : i32 to vector<8x1xi32>
    %8 = arith.remsi %4, %7 : vector<8x1xi32>
    %c0_i32_1 = arith.constant 0 : i32
    %9 = vector.broadcast %c0_i32_1 : i32 to vector<8x1xi32>
    %10 = arith.cmpi ne, %8, %9 : vector<8x1xi32>
    %c0_i32_2 = arith.constant 0 : i32
    %11 = vector.broadcast %c0_i32_2 : i32 to vector<8x1xi32>
    %12 = arith.cmpi slt, %8, %11 : vector<8x1xi32>
    %c0_i32_3 = arith.constant 0 : i32
    %13 = arith.cmpi slt, %6, %c0_i32_3 : i32
    %14 = vector.broadcast %13 : i1 to vector<8x1xi1>
    %15 = vector.broadcast %14 : vector<8x1xi1> to vector<8x1xi1>
    %16 = arith.xori %12, %15 : vector<8x1xi1>
    %17 = arith.andi %16, %10 : vector<8x1xi1>
    %18 = vector.broadcast %6 : i32 to vector<8x1xi32>
    %19 = arith.addi %8, %18 : vector<8x1xi32>
    %20 = arith.select %17, %19, %8 : vector<8x1xi1>, vector<8x1xi32>
    %c0_4 = arith.constant 0 : index
    %21 = memref.load %arg1[%c0_4] : memref<4xf32, #tpu.memory_space<smem>>
    %22 = vector.broadcast %21 : f32 to vector<8x1xf32>
    %c0_5 = arith.constant 0 : index
    %23 = memref.load %arg2[%c0_5] : memref<4xf32, #tpu.memory_space<smem>>
    %24 = vector.broadcast %23 : f32 to vector<8x1xf32>
    %c1_i32_6 = arith.constant 1 : i32
    %25 = vector.broadcast %c1_i32_6 : i32 to vector<8x1xi32>
    %26 = arith.cmpi eq, %20, %25 : vector<8x1xi32>
    %c1 = arith.constant 1 : index
    %27 = memref.load %arg1[%c1] : memref<4xf32, #tpu.memory_space<smem>>
    %28 = vector.broadcast %27 : f32 to vector<8x1xf32>
    %29 = arith.select %26, %28, %22 : vector<8x1xi1>, vector<8x1xf32>
    %c1_i32_7 = arith.constant 1 : i32
    %30 = vector.broadcast %c1_i32_7 : i32 to vector<8x1xi32>
    %31 = arith.cmpi eq, %20, %30 : vector<8x1xi32>
    %c1_8 = arith.constant 1 : index
    %32 = memref.load %arg2[%c1_8] : memref<4xf32, #tpu.memory_space<smem>>
    %33 = vector.broadcast %32 : f32 to vector<8x1xf32>
    %34 = arith.select %31, %33, %24 : vector<8x1xi1>, vector<8x1xf32>
    %c2_i32 = arith.constant 2 : i32
    %35 = vector.broadcast %c2_i32 : i32 to vector<8x1xi32>
    %36 = arith.cmpi eq, %20, %35 : vector<8x1xi32>
    %c2 = arith.constant 2 : index
    %37 = memref.load %arg1[%c2] : memref<4xf32, #tpu.memory_space<smem>>
    %38 = vector.broadcast %37 : f32 to vector<8x1xf32>
    %39 = arith.select %36, %38, %29 : vector<8x1xi1>, vector<8x1xf32>
    %c2_i32_9 = arith.constant 2 : i32
    %40 = vector.broadcast %c2_i32_9 : i32 to vector<8x1xi32>
    %41 = arith.cmpi eq, %20, %40 : vector<8x1xi32>
    %c2_10 = arith.constant 2 : index
    %42 = memref.load %arg2[%c2_10] : memref<4xf32, #tpu.memory_space<smem>>
    %43 = vector.broadcast %42 : f32 to vector<8x1xf32>
    %44 = arith.select %41, %43, %34 : vector<8x1xi1>, vector<8x1xf32>
    %c3_i32 = arith.constant 3 : i32
    %45 = vector.broadcast %c3_i32 : i32 to vector<8x1xi32>
    %46 = arith.cmpi eq, %20, %45 : vector<8x1xi32>
    %c3 = arith.constant 3 : index
    %47 = memref.load %arg1[%c3] : memref<4xf32, #tpu.memory_space<smem>>
    %48 = vector.broadcast %47 : f32 to vector<8x1xf32>
    %49 = arith.select %46, %48, %39 : vector<8x1xi1>, vector<8x1xf32>
    %c3_i32_11 = arith.constant 3 : i32
    %50 = vector.broadcast %c3_i32_11 : i32 to vector<8x1xi32>
    %51 = arith.cmpi eq, %20, %50 : vector<8x1xi32>
    %c3_12 = arith.constant 3 : index
    %52 = memref.load %arg2[%c3_12] : memref<4xf32, #tpu.memory_space<smem>>
    %53 = vector.broadcast %52 : f32 to vector<8x1xf32>
    %54 = arith.select %51, %53, %44 : vector<8x1xi1>, vector<8x1xf32>
    %55 = vector.broadcast %49 : vector<8x1xf32> to vector<8x256xf32>
    %56 = arith.mulf %55, %0 : vector<8x256xf32>
    %57 = vector.broadcast %54 : vector<8x1xf32> to vector<8x256xf32>
    %58 = arith.addf %56, %57 : vector<8x256xf32>
    %c0_13 = arith.constant 0 : index
    %c0_14 = arith.constant 0 : index
    %59 = vector.load %arg4[%c0_13, %c0_14] : memref<8x256xf32, #tpu.memory_space<vmem>>, vector<8x256xf32>
    tpu.vector_store %arg4[%c0_13, %c0_14], %58 {strides = array<i32>} : memref<8x256xf32, #tpu.memory_space<vmem>>, vector<8x256xf32>,
    return
  }
  func.func @transform_0(%arg0: i32, %arg1: memref<4xf32, #tpu.memory_space<smem>>, %arg2: memref<4xf32, #tpu.memory_space<smem>>) -> (i32, i32) {
    %c0_i32 = arith.constant 0 : i32
    %c0_i32_0 = arith.constant 0 : i32
    return %arg0, %c0_i32 : i32, i32
  }
  func.func @transform_1(%arg0: i32, %arg1: memref<4xf32, #tpu.memory_space<smem>>, %arg2: memref<4xf32, #tpu.memory_space<smem>>) -> (i32, i32) {
    %c0_i32 = arith.constant 0 : i32
    %c0_i32_0 = arith.constant 0 : i32
    return %arg0, %c0_i32 : i32, i32
  }
}

</mosaic_0001>

<bundles_post_ra>
// kernel: branch_1_fun.1
= control target key start
LH: loop header
LB: loop body
LE: loop exit
PB: predicated region body
PF: predicated region fallthrough
CT: control target
= control target key end

     0   :  { %s148_s0 = inlined_call_operand.vmem [shape: f32[4], index: 0, kind: input, shape index: {}]   ;;  %s149_s2 = inlined_call_operand.vmem [shape: f32[8,256], index: 2, kind: input, shape index: {}, may-alias: {2,3}]   ;;  %s150_s3 = inlined_call_operand.vmem [shape: f32[8,256], index: 3, kind: output, shape index: {}, may-alias: {2,3}]   ;;  %s151_s1 = inlined_call_operand.vmem [shape: f32[4], index: 1, kind: input, shape index: {}]  }
   0x1   :  { %s8_s14 = sshll.u32 %s148_s0, 4  ;;  %s12_s17 = sshll.u32 %s151_s1, 4  ;;  %s9_s14 = int_to_ptr.vmem [resolvable:$true] %s8_s14  ;;  %s13_s17 = int_to_ptr.vmem [resolvable:$true] %s12_s17 }
   0x2   :  { %s82_s18 = scalar_lea.vmem %s9_s14, 16  ;;  %p87_p1 = scmp.lt.s32.totalorder %s9_s14, %s9_s14 }
   0x3   :  { %p83_p0 = scmp.ne.s32.totalorder %s9_s14, %s82_s18  ;;  %p88_p2 = scmp.lt.s32.totalorder %s82_s18, %s82_s18 }
   0x5   :  { %p89_p3 = por %p88_p2, %p87_p1 }
   0x7   :  { %p90_p4 = pnand %p89_p3, %p83_p0 }
   0x9   :  { %93 = shalt.err (!%p90_p4)  }
   0xa   :  { %s108_s19 = smov [#allocation3]   ;;  %s94_s20 = scalar_lea.vmem %s13_s17, 16 }
   0xb   :  { %11 = dma.vmem_to_smem %s9_s14, 16, %s108_s19, [#allocation2] }
   0xc   :  { %p95_p5 = scmp.ne.s32.totalorder %s13_s17, %s94_s20  ;;  %p99_p6 = scmp.lt.s32.totalorder %s13_s17, %s13_s17 }
   0xd   :  { %p100_p7 = scmp.lt.s32.totalorder %s94_s20, %s94_s20 }
   0xf   :  { %p101_p8 = por %p100_p7, %p99_p6 }
  0x11   :  { %p102_p9 = pnand %p101_p8, %p95_p5 }
  0x13   :  { %105 = shalt.err (!%p102_p9)  }
  0x14   :  { %s109_s0 = smov [#allocation4]  }
  0x15   :  { %15 = dma.vmem_to_smem %s13_s17, 16, %s109_s0, [#allocation2] }
  0x16   :  { %106 = dma.done.wait [#allocation2], 32 }
  0x17   :  { %107 = vsyncadd [#allocation2], 4294967264 }
  0x18   :  { %17 = sfence }
  0x19   :  { %v23_v0 = vlaneseq  ;;  %s39_s1 = sld [smem:[#allocation3]]  ;;  %s74_s22 = sld [smem:[#allocation3 + $0x1]]  ;;  %v20_v7 = vld [vmem:[%s149_s2] sm:$0xff]  ;;  %v21_v12 = vld [vmem:[%s149_s2 + $0x8] sm:$0xff] }
  0x1a   :  { %s41_s21 = sld [smem:[#allocation4]]  ;;  %s75_s23 = sld [smem:[#allocation4 + $0x1]] }
  0x1b   :  { %v24_v1 = vshrl.u32 %v23_v0, 7  ;;  %s76_s24 = sld [smem:[#allocation3 + $0x2]]  ;;  %s78_s26 = sld [smem:[#allocation3 + $0x3]] }
  0x1c   :  { %s77_s25 = sld [smem:[#allocation4 + $0x2]]  ;;  %s79_s27 = sld [smem:[#allocation4 + $0x3]] }
  0x1d   :  { %v31_v2 = vand.u32 3, %v24_v1 }
  0x1f   :  { %v40_v3 = vstv %s39_s1  ;;  %vm43_vm0 = vcmp.eq.s32.totalorder %v31_v2, 1  ;;  %vm50_vm1 = vcmp.eq.s32.totalorder %v31_v2, 2  ;;  %v45_v5 = vstv %s74_s22 }
  0x20   :  { %v42_v4 = vstv %s41_s21  ;;  %v48_v6 = vstv %s75_s23  ;;  %vm57_vm2 = vcmp.eq.s32.totalorder %v31_v2, 3  ;;  %v46_v8 = vsel %vm43_vm0, %v45_v5, %v40_v3 }
  0x21   :  { %v49_v9 = vsel %vm43_vm0, %v48_v6, %v42_v4  ;;  %v52_v10 = vstv %s76_s24  ;;  %v59_v15 = vstv %s78_s26 }
  0x22   :  { %v55_v11 = vstv %s77_s25  ;;  %v53_v13 = vsel %vm50_vm1, %v52_v10, %v46_v8  ;;  %v62_v16 = vstv %s79_s27 }
  0x23   :  { %v56_v14 = vsel %vm50_vm1, %v55_v11, %v49_v9  ;;  %v60_v17 = vsel %vm57_vm2, %v59_v15, %v53_v13 }
  0x24   :  { %v63_v18 = vsel %vm57_vm2, %v62_v16, %v56_v14  ;;  %v64_v19 = vmul.f32 %v60_v17, %v20_v7  ;;  %v65_v20 = vmul.f32 %v60_v17, %v21_v12 }
  0x26   :  { %v66_v21 = vadd.f32 %v64_v19, %v63_v18  ;;  %v67_v22 = vadd.f32 %v65_v20, %v63_v18 }
  0x28   :  { %68 = vst [vmem:[%s150_s3] sm:$0xff] %v66_v21  ;;  %69 = vst [vmem:[%s150_s3 + $0x8] sm:$0xff] %v67_v22 }

</bundles_post_ra>
